<compile_context>
chip_gen: v7x
topology: tpu7x:2x2x1
jax: 0.10.0
libtpu: 0.0.40
codegen_flags: <defaults>
</compile_context>

<pallas_src>
import math
from functools import partial

import jax
import jax.numpy as jnp
from jax.experimental import pallas as pl
from jax.experimental.pallas import tpu as pltpu

_LANE = 128
_SUBLANE = 8


def make_positional_encoding(embed_dim: int, max_len: int = 48,
                             dtype=jnp.float32) -> jnp.ndarray:
    """Build the pe buffer exactly as the PyTorch __init__ does."""
    padded_dim = embed_dim if embed_dim % 2 == 0 else embed_dim + 1
    pe = jnp.zeros((max_len, padded_dim), dtype=jnp.float32)
    position = jnp.arange(0, max_len, dtype=jnp.float32)[:, None]
    div_term = jnp.exp(
        jnp.arange(0, embed_dim, 2, dtype=jnp.float32) * (-math.log(10000.0) / embed_dim)
    )
    pe = pe.at[:, 0::2].set(jnp.sin(position * div_term))
    pe = pe.at[:, 1::2].set(jnp.cos(position * div_term))
    pe = pe[:, :embed_dim]
    return pe[None, :, :].astype(dtype)          # (1, max_len, E)


def _cdiv(a: int, b: int) -> int:
    return -(-a // b)


def _round_down(v: int, unit: int) -> int:
    return max(unit, (v // unit) * unit)


def _pick_fold(B: int, S: int) -> int:
    """Smallest r in {1,2,4,8} with (B*r) % 8 == 0 and S % r == 0; else 1."""
    for r in (1, 2, 4, 8):
        if (B * r) % _SUBLANE == 0 and S % r == 0:
            return r
    return 1


def _hw_budgets():
    """(per-block payload budget bytes, vmem_limit_bytes) for the current TPU gen."""
    vmem_cap = None
    try:
        info = pltpu.get_tpu_info()
        vmem_cap = getattr(info, "vmem_capacity_bytes", None)
    except Exception:
        vmem_cap = None
    if not vmem_cap:
        return 4 << 20, 32 << 20
    tile = int(max(2 << 20, min(8 << 20, vmem_cap // 12)))
    # x and out tiles are each double-buffered (~4x tile resident) + pe + scratch.
    limit = int(min((vmem_cap * 3) // 4, 4 * tile + (16 << 20)))
    return tile, limit


def _add_pe_kernel(x_ref, pe_ref, o_ref, *, reps: int):
    pe = pe_ref[...]
    if reps > 1:
        pe = jnp.tile(pe, (reps, 1))          # replicate folded pe rows over the batch
    o_ref[...] = x_ref[...] + pe              # (1, tc) pe broadcasts when reps == 1


def positional_encoding_forward(x: jnp.ndarray, pe: jnp.ndarray, *,
                                min_pallas_bytes: int = 1 << 20) -> jnp.ndarray:
    """x: (B, S, E); pe: (1, max_len, E). Returns x + pe[:, :S, :]."""
    B, S, E = x.shape
    assert pe.ndim == 3 and pe.shape[0] == 1 and pe.shape[2] == E and pe.shape[1] >= S

    if pe.dtype != x.dtype:
        pe = pe.astype(x.dtype)
    itemsize = jnp.dtype(x.dtype).itemsize
    total_bytes = B * S * E * itemsize

    # Tiny inputs: plain JAX add fuses into neighbors; Pallas overhead would dominate.
    if total_bytes < min_pallas_bytes:
        return x + pe[:, :S, :]

    tile_bytes, vmem_limit = _hw_budgets()

    # Sublane folding (for B not a multiple of 8): x2[b*r + c, :] holds S//r positions.
    r = _pick_fold(B, S)
    B2, N2 = B * r, (S // r) * E
    x2 = x.reshape(B2, N2)                    # free reshape of a contiguous array

    # Row (sublane) tile first.
    if B2 < _SUBLANE:
        tb = B2                               # full extent: legal for any size
    else:
        rows_full_width = tile_bytes // max(N2 * itemsize, 1)
        if rows_full_width >= _SUBLANE:
            tb = min(_round_down(B2, _SUBLANE), _round_down(rows_full_width, _SUBLANE))
        else:
            tb = _SUBLANE

    # Column (lane) tile derived from the remaining per-block byte budget.
    if N2 <= _LANE:
        tc = N2                               # full extent
    else:
        col_budget = max(_LANE, tile_bytes // max(tb * itemsize, 1))
        tc = min(_round_down(col_budget, _LANE), _round_down(N2, _LANE))

    # Keep >= 2 blocks so both v7x TensorCores get work and DMA/compute overlap.
    if _cdiv(B2, tb) * _cdiv(N2, tc) < 2:
        if N2 >= 2 * _LANE:
            tc = _round_down(_cdiv(N2, 2), _LANE)
        elif B2 >= 2 * _SUBLANE:
            tb = _round_down(_cdiv(B2, 2), _SUBLANE)

    # pe operand: stream once per column block; broadcast over batch inside the kernel.
    if r == 1 and tc % _LANE == 0:
        # Whole buffer, lane-flattened; column windows only address the first S*E
        # columns, i.e. exactly pe[:, :S, :]. No wrapper-side slice needed.
        pe2 = pe.reshape(1, pe.shape[1] * E)
    elif r == 1:
        pe2 = pe[:, :S, :].reshape(1, N2)
    else:
        pe2 = pe[:, :S, :].reshape(r, N2)
    pe_rows = pe2.shape[0]
    reps = tb // r if r > 1 else 1

    # Column axis outermost: pe block index (0, j) is constant across inner row steps,
    # so Pallas de-duplicates the DMA and pe is read from HBM exactly once.
    grid = (_cdiv(N2, tc), _cdiv(B2, tb))

    cost = pl.CostEstimate(
        flops=B * S * E,
        transcendentals=0,
        bytes_accessed=(2 * B * S * E + S * E) * itemsize,
    )

    out2 = pl.pallas_call(
        partial(_add_pe_kernel, reps=reps),
        out_shape=jax.ShapeDtypeStruct((B2, N2), x.dtype),
        grid_spec=pltpu.PrefetchScalarGridSpec(
            num_scalar_prefetch=0,
            grid=grid,
            in_specs=[
                pl.BlockSpec((tb, tc), lambda j, i: (i, j)),        # x tile
                pl.BlockSpec((pe_rows, tc), lambda j, i: (0, j)),   # pe row block
            ],
            out_specs=pl.BlockSpec((tb, tc), lambda j, i: (i, j)),
        ),
        compiler_params=pltpu.CompilerParams(
            dimension_semantics=("parallel", "parallel"),
            vmem_limit_bytes=vmem_limit,
        ),
        cost_estimate=cost,
    )(x2, pe2)

    return out2.reshape(B, S, E)


if __name__ == "__main__":
    key = jax.random.PRNGKey(0)
    k1, k2, k3 = jax.random.split(key, 3)

    # 1) Nominal module shape (batch=2, seq=8, embed=32). Force the Pallas path so the
    #    kernel itself is exercised (the default bypass would handle something this tiny).
    B, S, E, MAXLEN = 2, 8, 32, 48
    pe_a = make_positional_encoding(E, MAXLEN, dtype=jnp.float32)
    x_a = jax.random.normal(k1, (B, S, E), dtype=jnp.float32)
    out_a = jax.block_until_ready(positional_encoding_forward(x_a, pe_a, min_pallas_bytes=0))
    ref_a = x_a + pe_a[:, :S, :]
    assert out_a.shape == x_a.shape
    assert jnp.allclose(out_a, ref_a, atol=1e-6, rtol=1e-6), "mismatch (small shape)"

    # 2) Larger, lane-aligned shape: exercises the multi-block / megacore path via the
    #    default threshold (3 MiB of activations).
    B2_, S2_, E2_ = 16, 48, 1024
    pe_b = make_positional_encoding(E2_, 48, dtype=jnp.float32)
    x_b = jax.random.normal(k2, (B2_, S2_, E2_), dtype=jnp.float32)
    out_b = jax.block_until_ready(positional_encoding_forward(x_b, pe_b))
    ref_b = x_b + pe_b[:, :S2_, :]
    assert jnp.allclose(out_b, ref_b, atol=1e-6, rtol=1e-6), "mismatch (large shape)"

    # 3) Unaligned batch + non-multiple-of-128 width: exercises sublane folding (r=8)
    #    and partial edge column blocks.
    B3_, S3_, E3_ = 3, 48, 96
    pe_c = make_positional_encoding(E3_, 48, dtype=jnp.float32)
    x_c = jax.random.normal(k3, (B3_, S3_, E3_), dtype=jnp.float32)
    out_c = jax.block_until_ready(positional_encoding_forward(x_c, pe_c, min_pallas_bytes=0))
    ref_c = x_c + pe_c[:, :S3_, :]
    assert jnp.allclose(out_c, ref_c, atol=1e-6, rtol=1e-6), "mismatch (unaligned shape)"

    print("KERNEL_OK")
</pallas_src>

<mosaic_0001>
module attributes {stable_mosaic.version = 11 : i64} {
  func.func @_add_pe_kernel(%arg0: i32, %arg1: i32, %arg2: memref<8x64xf32, #tpu.memory_space<vmem>>, %arg3: memref<4x64xf32, #tpu.memory_space<vmem>>, %arg4: memref<8x64xf32, #tpu.memory_space<vmem>>) attributes {dimension_semantics = [#tpu.dimension_semantics<parallel>, #tpu.dimension_semantics<parallel>], iteration_bounds = array<i64: 1, 1>, scalar_prefetch = 0 : i64, scratch_operands = 0 : i64, tpu.core_type = #tpu.core_type<tc>, window_params = [{transform_indices = @transform_0, window_bounds = array<i64: 8, 64>}, {transform_indices = @transform_1, window_bounds = array<i64: 4, 64>}, {transform_indices = @transform_2, window_bounds = array<i64: 8, 64>}]} {
    %c0 = arith.constant 0 : index
    %c0_0 = arith.constant 0 : index
    %0 = vector.load %arg3[%c0, %c0_0] : memref<4x64xf32, #tpu.memory_space<vmem>>, vector<4x64xf32>
    %1 = tpu.concatenate %0, %0 in 0 : vector<4x64xf32>, vector<4x64xf32> -> vector<8x64xf32>
    %c0_1 = arith.constant 0 : index
    %c0_2 = arith.constant 0 : index
    %2 = vector.load %arg2[%c0_1, %c0_2] : memref<8x64xf32, #tpu.memory_space<vmem>>, vector<8x64xf32>
    %3 = arith.addf %2, %1 : vector<8x64xf32>
    %c0_3 = arith.constant 0 : index
    %c0_4 = arith.constant 0 : index
    %4 = vector.load %arg4[%c0_3, %c0_4] : memref<8x64xf32, #tpu.memory_space<vmem>>, vector<8x64xf32>
    tpu.vector_store %arg4[%c0_3, %c0_4], %3 {strides = array<i32>} : memref<8x64xf32, #tpu.memory_space<vmem>>, vector<8x64xf32>,
    return
  }
  func.func @transform_0(%arg0: i32, %arg1: i32) -> (i32, i32) {
    %c0_i32 = arith.constant 0 : i32
    return %arg1, %arg0 : i32, i32
  }
  func.func @transform_1(%arg0: i32, %arg1: i32) -> (i32, i32) {
    %c0_i32 = arith.constant 0 : i32
    %c0_i32_0 = arith.constant 0 : i32
    return %c0_i32, %arg0 : i32, i32
  }
  func.func @transform_2(%arg0: i32, %arg1: i32) -> (i32, i32) {
    %c0_i32 = arith.constant 0 : i32
    return %arg1, %arg0 : i32, i32
  }
}

</mosaic_0001>

<bundles_post_ra>
// kernel: tpu_custom_call.1
= control target key start
LH: loop header
LB: loop body
LE: loop exit
PB: predicated region body
PF: predicated region fallthrough
CT: control target
= control target key end

     0   :  { %7 = vsyncpa [#allocation3], 0  ;;  %s191_s0 = inlined_call_operand.hbm [shape: f32[8,64], index: 0, kind: input, shape index: {}]   ;;  %s192_s1 = inlined_call_operand.hbm [shape: f32[4,64], index: 1, kind: input, shape index: {}]   ;;  %s193_s2 = inlined_call_operand.hbm [shape: f32[8,64], index: 2, kind: output, shape index: {}]  }
   0x1   :  { %8 = vsyncpa [#allocation6], 0 }
   0x2   :  { %9 = vsyncpa [#allocation4], 0  ;;  %s137_s9 = smov [#allocation2]   ;;  %s138_s11 = smov [#allocation5]  }
   0x3   :  { %s16_s10 = sshll.u32 %s137_s9, 4  ;;  %s26_s12 = sshll.u32 %s138_s11, 4  ;;  %s17_s10 = int_to_ptr.vmem [resolvable:$true] %s16_s10  ;;  %s27_s12 = int_to_ptr.vmem [resolvable:$true] %s26_s12 }
   0x4   :  { %s65_s15 = scalar_lea.hbm %s191_s0, 128 }
   0x5   :  { %p66_p0 = scmp.ne.s32.totalorder %s191_s0, %s65_s15  ;;  %p69_p1 = scmp.lt.u32.totalorder %s65_s15, %s191_s0 }
   0x7   :  { %p71_p2 = pnand %p69_p1, %p66_p0 }
   0x9   :  { %74 = shalt.err (!%p71_p2)
}
   0xa   :  { %s75_s20 = scalar_lea.vmem %s17_s10, 128  ;;  %p80_p4 = scmp.lt.s32.totalorder %s17_s10, %s17_s10 }
   0xb   :  { %p76_p3 = scmp.ne.s32.totalorder %s17_s10, %s75_s20  ;;  %p81_p5 = scmp.lt.s32.totalorder %s75_s20, %s75_s20 }
   0xd   :  { %p82_p6 = por %p81_p5, %p80_p4 }
   0xf   :  { %p83_p7 = pnand %p82_p6, %p76_p3 }
  0x11   :  { %86 = shalt.err (!%p83_p7)
}
  0x12   :  { %19 = dma.hbm_to_vmem [thread:$0]  %s191_s0, 128, %s17_s10, [#allocation3]  }
  0x13   :  { %s87_s25 = scalar_lea.hbm %s192_s1, 64 }
  0x14   :  { %p88_p8 = scmp.ne.s32.totalorder %s192_s1, %s87_s25  ;;  %p91_p9 = scmp.lt.u32.totalorder %s87_s25, %s192_s1 }
  0x16   :  { %p93_p10 = pnand %p91_p9, %p88_p8 }
  0x18   :  { %96 = shalt.err (!%p93_p10)
}
  0x19   :  { %s97_s30 = scalar_lea.vmem %s27_s12, 64  ;;  %p102_p12 = scmp.lt.s32.totalorder %s27_s12, %s27_s12 }
  0x1a   :  { %p98_p11 = scmp.ne.s32.totalorder %s27_s12, %s97_s30  ;;  %p103_p13 = scmp.lt.s32.totalorder %s97_s30, %s97_s30 }
  0x1c   :  { %p104_p0 = por %p103_p13, %p102_p12 }
  0x1e   :  { %p105_p1 = pnand %p104_p0, %p98_p11 }
  0x20   :  { %108 = shalt.err (!%p105_p1)
}
  0x21   :  { %29 = dma.hbm_to_vmem [thread:$0]  %s192_s1, 64, %s27_s12, [#allocation6]  }
  0x22   :  { %131 = dma.done.wait [#allocation3], 128  }
  0x23   :  { %132 = vsyncadd [#allocation3], 4294967168 }
  0x24   :  { %133 = dma.done.wait [#allocation6], 64  }
  0x25   :  { %134 = vsyncadd [#allocation6], 4294967232  ;;  %v36_v0 = vld [vmem:[#allocation5] sm:$0xf]  ;;  %vm40_vm0 = vcmask 1043456   ;;  %v42_v2 = vld [vmem:[#allocation2] sm:$0xff] }
  0x26   :  { %v38_v1 = vrot.slane %v36_v0, 4  ;;  %s139_s4 = smov [#allocation7]   ;;  %vm44_vm1 = vcmask 523264  }
  0x27   :  { %s52_s5 = sshll.u32 %s139_s4, 4  ;;  %s53_s5 = int_to_ptr.vmem [resolvable:$true] %s52_s5 }
  0x28   :  { %v41_v3 = vsel %vm40_vm0, %v36_v0, %v38_v1  ;;  %s109_s6 = scalar_lea.vmem %s53_s5, 128  ;;  %p114_p3 = scmp.lt.s32.totalorder %s53_s5, %s53_s5 }
  0x29   :  { %v43_v4 = vadd.f32 %v42_v2, %v41_v3  ;;  %p110_p2 = scmp.ne.s32.totalorder %s53_s5, %s109_s6  ;;  %p115_p4 = scmp.lt.s32.totalorder %s109_s6, %s109_s6 }
  0x2b   :  { %45 = vst.msk [vmem:[#allocation7] sm:$0xff] %vm44_vm1, %v43_v4  ;;  %p116_p5 = por %p115_p4, %p114_p3 }
  0x2d   :  { %p117_p6 = pnand %p116_p5, %p110_p2 }
  0x2f   :  { %120 = shalt.err (!%p117_p6)
}
  0x30   :  { %s121_s8 = scalar_lea.hbm %s193_s2, 128 }
  0x31   :  { %p122_p7 = scmp.ne.s32.totalorder %s193_s2, %s121_s8  ;;  %p125_p8 = scmp.lt.u32.totalorder %s121_s8, %s193_s2 }
  0x33   :  { %p127_p9 = pnand %p125_p8, %p122_p7 }
  0x35   :  { %130 = shalt.err (!%p127_p9)
}
  0x36   :  { %55 = dma.vmem_to_hbm [thread:$0]  %s53_s5, 128, %s193_s2, [#allocation4]  }
  0x37   :  { %135 = dma.done.wait [#allocation4], 128  }
  0x38   :  { %136 = vsyncadd [#allocation4], 4294967168 }
  0x39   :  { %59 = vsyncpa [#allocation3], 1 }
  0x3a   :  { %60 = vsyncpa [#allocation6], 1 }
  0x3b   :  { %61 = vsyncpa [#allocation4], 1 }

</bundles_post_ra>
